<compile_context>
chip_gen: v7x
topology: tpu7x:2x2x1
jax: 0.10.0
libtpu: 0.0.40
codegen_flags: <defaults>
</compile_context>

<pallas_src>
import functools

import jax
import jax.numpy as jnp
from jax.experimental import pallas as pl
from jax.experimental.pallas import tpu as pltpu


def _round_up(x: int, mult: int) -> int:
    return ((x + mult - 1) // mult) * mult


def _cdiv(a: int, b: int) -> int:
    return -(-a // b)


# --------------------------------------------------------------------------- #
# Kernel body
# --------------------------------------------------------------------------- #
def _cosface_kernel(labels_ref, logits_ref, out_ref, *, s: float, m: float):
    # labels_ref: (tm, 1) int32 block (reused across all column tiles)
    # logits_ref / out_ref: (tm, tc) block in the logits dtype
    j = pl.program_id(1)                                # column-tile index
    tm, tc = out_ref.shape

    # Shift labels to this tile's local column coordinates (one cheap (tm,1) op).
    # A -1 (or any negative) label becomes negative and never matches a column.
    lab_local = labels_ref[...] - j * tc                # (tm, 1) int32
    is_target = jax.lax.broadcasted_iota(jnp.int32, (tm, tc), 1) == lab_local

    x = logits_ref[...]
    margin = jnp.where(is_target,
                       jnp.asarray(m, x.dtype),
                       jnp.asarray(0.0, x.dtype))
    out_ref[...] = (x - margin) * jnp.asarray(s, x.dtype)   # single fused store


# --------------------------------------------------------------------------- #
# Host-side helpers: VMEM budget, core sharding, tile selection
# --------------------------------------------------------------------------- #
def _vmem_limit_bytes() -> int:
    cap = 64 << 20                                        # conservative default
    try:
        cap = int(pltpu.get_tpu_info().vmem_capacity_bytes)
    except Exception:
        pass
    # <= 3/4 of physical (v7x: 48 MiB), never above 64 MiB (ample for v5e/v6e).
    return max(16 << 20, min(64 << 20, (cap * 3) // 4))


def _dimension_semantics(grid):
    par = getattr(pltpu, "PARALLEL", "parallel")
    sems = [par, par]
    try:
        kind = jax.devices()[0].device_kind.lower()
        if "v7" in kind and hasattr(pltpu, "CORE_PARALLEL"):
            # Shard the larger grid axis across v7x's 2 TensorCores.
            ax = 0 if grid[0] >= 2 else (1 if grid[1] >= 2 else None)
            if ax is not None:
                sems[ax] = pltpu.CORE_PARALLEL
    except Exception:
        pass
    return tuple(sems)


def _choose_tiles(N: int, C: int, itemsize: int, block_bytes: int):
    sublane = max(8, 32 // itemsize)                      # f32:8  bf16:16  int8:32
    c_pad = _round_up(C, 128)

    # Column tile: one fully contiguous tile when it fits the budget with at
    # least one sublane-group of rows; otherwise balanced multiples of 128.
    if c_pad * itemsize * sublane <= block_bytes:
        tc = C
    else:
        tc_cap = max(128, min(8192,
                              (block_bytes // (itemsize * sublane)) // 128 * 128))
        tc = _round_up(_cdiv(c_pad, _cdiv(c_pad, tc_cap)), 128)

    # Row tile: as many rows as fit the budget, balanced over row tiles.
    c_lanes = _round_up(tc, 128)
    tm_cap = max(sublane, min(1024,
                              (block_bytes // (c_lanes * itemsize)) // sublane * sublane))
    if tm_cap >= N:
        tm = N                                            # single full-dim row tile
    else:
        tm = _round_up(_cdiv(N, _cdiv(N, tm_cap)), sublane)
    return tm, tc


# --------------------------------------------------------------------------- #
# Public entry point
# --------------------------------------------------------------------------- #
def cosface(logits: jax.Array, labels: jax.Array, s: float = 64.0, m: float = 0.4,
            *, tm: int | None = None, tc: int | None = None) -> jax.Array:
    """CosFace forward: (logits - m * onehot(labels)) * s, labels == -1 ignored.

    logits: (N, C) float array (f32 or bf16), labels: (N,) integer.
    For zero-copy in-place behaviour, donate `logits` (jit donate_argnums).
    """
    N, C = logits.shape
    labels2d = labels.astype(jnp.int32).reshape(N, 1)

    itemsize = jnp.dtype(logits.dtype).itemsize
    vmem_limit = _vmem_limit_bytes()
    block_bytes = min(6 << 20, vmem_limit // 6)           # in+out double-buffered fits

    auto_tm, auto_tc = _choose_tiles(N, C, itemsize, block_bytes)
    tm = auto_tm if tm is None else tm
    tc = auto_tc if tc is None else tc

    grid = (pl.cdiv(N, tm), pl.cdiv(C, tc))               # rows outer, cols inner
    kernel = functools.partial(_cosface_kernel, s=float(s), m=float(m))

    return pl.pallas_call(
        kernel,
        out_shape=jax.ShapeDtypeStruct((N, C), logits.dtype),
        grid_spec=pltpu.PrefetchScalarGridSpec(
            num_scalar_prefetch=0,
            grid=grid,
            in_specs=[
                pl.BlockSpec((tm, 1), lambda i, j: (i, 0)),    # labels: reused across j
                pl.BlockSpec((tm, tc), lambda i, j: (i, j)),   # logits tile
            ],
            out_specs=pl.BlockSpec((tm, tc), lambda i, j: (i, j)),
        ),
        # Output tile fully overwrites the input tile -> alias (effective when donated).
        input_output_aliases={1: 0},
        compiler_params=pltpu.CompilerParams(
            dimension_semantics=_dimension_semantics(grid),
            vmem_limit_bytes=vmem_limit),
    )(labels2d, logits)


def cosface_ref(logits, labels, s=64.0, m=0.4):
    """Pure-JAX reference mirroring the PyTorch forward (in the logits dtype)."""
    N, C = logits.shape
    onehot = (jnp.arange(C)[None, :] == labels[:, None]) & (labels[:, None] != -1)
    margin = jnp.where(onehot, jnp.asarray(m, logits.dtype), jnp.asarray(0.0, logits.dtype))
    return (logits - margin) * jnp.asarray(s, logits.dtype)


if __name__ == "__main__":
    key = jax.random.PRNGKey(0)
    k1, k2, k3, k4, k5, k6 = jax.random.split(key, 6)

    # Case 1: aligned shapes (N % 8 == 0, C % 128 == 0), f32.
    N, C = 16, 128
    logits = jax.random.normal(k1, (N, C), dtype=jnp.float32)
    labels = jax.random.randint(k2, (N,), 0, C, dtype=jnp.int32)
    labels = labels.at[0].set(-1).at[5].set(-1)            # "ignore" rows
    ref = cosface_ref(logits, labels, s=64.0, m=0.4)
    out = jax.block_until_ready(cosface(logits, labels, s=64.0, m=0.4))
    assert jnp.allclose(out, ref, atol=1e-5, rtol=1e-5), "mismatch (aligned f32)"

    # Case 2: ragged shapes, auto tiles (single full-dim block, no padding).
    N2, C2 = 20, 200
    logits2 = jax.random.normal(k3, (N2, C2), dtype=jnp.float32)
    labels2 = jax.random.randint(k4, (N2,), 0, C2, dtype=jnp.int32).at[3].set(-1)
    ref2 = cosface_ref(logits2, labels2, s=64.0, m=0.4)
    out2 = jax.block_until_ready(cosface(logits2, labels2, s=64.0, m=0.4))
    assert jnp.allclose(out2, ref2, atol=1e-5, rtol=1e-5), "mismatch (ragged f32)"

    # Case 2b: same ragged shapes with forced small tiles -> exercises partial
    # edge blocks along both axes (the no-padding path).
    out2b = jax.block_until_ready(cosface(logits2, labels2, s=64.0, m=0.4, tm=8, tc=128))
    assert jnp.allclose(out2b, ref2, atol=1e-5, rtol=1e-5), "mismatch (partial blocks)"

    # Case 3: bf16 passthrough (no widening to f32 inside the kernel).
    N3, C3 = 24, 200
    logits3 = jax.random.normal(k5, (N3, C3), dtype=jnp.float32).astype(jnp.bfloat16)
    labels3 = jax.random.randint(k6, (N3,), 0, C3, dtype=jnp.int32).at[7].set(-1)
    ref3 = cosface_ref(logits3, labels3, s=64.0, m=0.4)
    out3 = jax.block_until_ready(cosface(logits3, labels3, s=64.0, m=0.4))
    assert jnp.allclose(out3.astype(jnp.float32), ref3.astype(jnp.float32),
                        atol=1.0, rtol=2e-2), "mismatch (bf16)"

    print("KERNEL_OK")
</pallas_src>

<mosaic_0001>
module attributes {stable_mosaic.version = 11 : i64} {
  func.func @_cosface_kernel(%arg0: i32, %arg1: i32, %arg2: memref<16x1xi32, #tpu.memory_space<vmem>>, %arg3: memref<16x128xf32, #tpu.memory_space<vmem>>, %arg4: memref<16x128xf32, #tpu.memory_space<vmem>>) attributes {dimension_semantics = [#tpu.dimension_semantics<parallel>, #tpu.dimension_semantics<parallel>], iteration_bounds = array<i64: 1, 1>, scalar_prefetch = 0 : i64, scratch_operands = 0 : i64, tpu.core_type = #tpu.core_type<tc>, window_params = [{transform_indices = @transform_0, window_bounds = array<i64: 16, 1>}, {transform_indices = @transform_1, window_bounds = array<i64: 16, 128>}, {transform_indices = @transform_2, window_bounds = array<i64: 16, 128>}]} {
    %c0 = arith.constant 0 : index
    %c0_0 = arith.constant 0 : index
    %0 = vector.load %arg2[%c0, %c0_0] : memref<16x1xi32, #tpu.memory_space<vmem>>, vector<16x1xi32>
    %c128_i32 = arith.constant 128 : i32
    %1 = arith.muli %arg1, %c128_i32 : i32
    %2 = vector.broadcast %1 : i32 to vector<16x1xi32>
    %3 = arith.subi %0, %2 : vector<16x1xi32>
    %4 = tpu.iota {dimensions = array<i32: 1>} : vector<16x128xi32>
    %5 = vector.broadcast %3 : vector<16x1xi32> to vector<16x128xi32>
    %6 = arith.cmpi eq, %4, %5 : vector<16x128xi32>
    %c0_1 = arith.constant 0 : index
    %c0_2 = arith.constant 0 : index
    %7 = vector.load %arg3[%c0_1, %c0_2] : memref<16x128xf32, #tpu.memory_space<vmem>>, vector<16x128xf32>
    %cst = arith.constant 4.000000e-01 : f32
    %cst_3 = arith.constant 0.000000e+00 : f32
    %8 = vector.broadcast %cst : f32 to vector<16x128xf32>
    %9 = vector.broadcast %cst_3 : f32 to vector<16x128xf32>
    %10 = arith.select %6, %8, %9 : vector<16x128xi1>, vector<16x128xf32>
    %11 = arith.subf %7, %10 : vector<16x128xf32>
    %cst_4 = arith.constant 6.400000e+01 : f32
    %12 = vector.broadcast %cst_4 : f32 to vector<16x128xf32>
    %13 = arith.mulf %11, %12 : vector<16x128xf32>
    %c0_5 = arith.constant 0 : index
    %c0_6 = arith.constant 0 : index
    %14 = vector.load %arg4[%c0_5, %c0_6] : memref<16x128xf32, #tpu.memory_space<vmem>>, vector<16x128xf32>
    tpu.vector_store %arg4[%c0_5, %c0_6], %13 {strides = array<i32>} : memref<16x128xf32, #tpu.memory_space<vmem>>, vector<16x128xf32>,
    return
  }
  func.func @transform_0(%arg0: i32, %arg1: i32) -> (i32, i32) {
    %c0_i32 = arith.constant 0 : i32
    %c0_i32_0 = arith.constant 0 : i32
    return %arg0, %c0_i32 : i32, i32
  }
  func.func @transform_1(%arg0: i32, %arg1: i32) -> (i32, i32) {
    %c0_i32 = arith.constant 0 : i32
    return %arg0, %arg1 : i32, i32
  }
  func.func @transform_2(%arg0: i32, %arg1: i32) -> (i32, i32) {
    %c0_i32 = arith.constant 0 : i32
    return %arg0, %arg1 : i32, i32
  }
}

</mosaic_0001>

<bundles_post_ra>
// kernel: tpu_custom_call.1
= control target key start
LH: loop header
LB: loop body
LE: loop exit
PB: predicated region body
PF: predicated region fallthrough
CT: control target
= control target key end

     0   :  { %7 = vsyncpa [#allocation3], 0  ;;  %s181_s0 = inlined_call_operand.vmem [shape: s32[16,1], index: 0, kind: input, shape index: {}]   ;;  %s182_s1 = inlined_call_operand.hbm [shape: f32[16,128], index: 1, kind: input, shape index: {}, may-alias: {1,2}]   ;;  %s183_s2 = inlined_call_operand.hbm [shape: f32[16,128], index: 2, kind: output, shape index: {}, may-alias: {1,2}]  }
   0x1   :  { %8 = vsyncpa [#allocation4], 0  ;;  %s124_s9 = smov [#allocation2]   ;;  %s76_s13 = scalar_lea.hbm %s182_s1, 256 }
   0x2   :  { %s16_s10 = sshll.u32 %s124_s9, 4  ;;  %p77_p0 = scmp.ne.s32.totalorder %s182_s1, %s76_s13  ;;  %s17_s10 = int_to_ptr.vmem [resolvable:$true] %s16_s10 }
   0x3   :  { %p80_p1 = scmp.lt.u32.totalorder %s76_s13, %s182_s1 }
   0x5   :  { %p82_p2 = pnand %p80_p1, %p77_p0 }
   0x7   :  { %85 = shalt.err (!%p82_p2)
}
   0x8   :  { %s86_s18 = scalar_lea.vmem %s17_s10, 256  ;;  %p91_p4 = scmp.lt.s32.totalorder %s17_s10, %s17_s10 }
   0x9   :  { %p87_p3 = scmp.ne.s32.totalorder %s17_s10, %s86_s18  ;;  %p92_p5 = scmp.lt.s32.totalorder %s86_s18, %s86_s18 }
   0xb   :  { %p93_p6 = por %p92_p5, %p91_p4 }
   0xd   :  { %p94_p7 = pnand %p93_p6, %p87_p3 }
   0xf   :  { %97 = shalt.err (!%p94_p7)
}
  0x10   :  { %s125_s19 = smov 128   ;;  %s126_s20 = smov 8  }
  0x11   :  { %22 = dma.hbm_to_vmem [thread:$0]  %s182_s1, 256, %s17_s10, [#allocation3], %s125_s19, %s125_s19, %s126_s20  }
  0x12   :  { %120 = dma.done.wait [#allocation3], 256  }
  0x13   :  { %121 = vsyncadd [#allocation3], 4294967040  ;;  %v127_v0 = vmov 0   ;;  %v26_v1 = vld [vmem:[%s181_s0] sm:$0xff]  ;;  %v27_v2 = vld [vmem:[%s181_s0 + $0x8] sm:$0xff]  ;;  %v32_v3 = vlaneseq  ;;  %v128_v7 = vmov 0.0  }
  0x14   :  { %75 = vset.pattern.permute.xlu0 %v127_v0  ;;  %v42_v5 = vld [vmem:[#allocation2] sm:$0xff]  ;;  %v43_v10 = vld [vmem:[#allocation2 + $0x8] sm:$0xff]  ;;  %s129_s1 = smov [#allocation5]  }
  0x15   :  { %35 = vperm.xlu0 %75, %v26_v1   ;;  %v33_v4 = vand.u32 127, %v32_v3  ;;  %s57_s27 = sshll.u32 %s129_s1, 4  ;;  %s58_s27 = int_to_ptr.vmem [resolvable:$true] %s57_s27 }
  0x16   :  { %s98_s0 = scalar_lea.vmem %s58_s27, 256  ;;  %p103_p9 = scmp.lt.s32.totalorder %s58_s27, %s58_s27 }
  0x17   :  { %p99_p8 = scmp.ne.s32.totalorder %s58_s27, %s98_s0  ;;  %p104_p10 = scmp.lt.s32.totalorder %s98_s0, %s98_s0 }
  0x19   :  { %38 = vperm.xlu0 %75, %v27_v2   ;;  %p105_p11 = por %p104_p10, %p103_p9 }
  0x1b   :  { %p106_p12 = pnand %p105_p11, %p99_p8 }
  0x94   :  { %v36_v6 = vpop.permute.xlu0 %35 }
  0x95   :  { %vm40_vm0 = vcmp.eq.s32.totalorder %v33_v4, %v36_v6 }
  0x96   :  { %v44_v8 = vsel %vm40_vm0, 0.4, %v128_v7 }
  0x97   :  { %v46_v9 = vsub.f32 %v42_v5, %v44_v8 }
  0x98   :  { %v39_v11 = vpop.permute.xlu0 %38 }
  0x99   :  { %v48_v12 = vmul.f32 64.0, %v46_v9  ;;  %vm41_vm1 = vcmp.eq.s32.totalorder %v33_v4, %v39_v11 }
  0x9a   :  { %v45_v13 = vsel %vm41_vm1, 0.4, %v128_v7 }
  0x9b   :  { %50 = vst [vmem:[#allocation5] sm:$0xff] %v48_v12  ;;  %v47_v14 = vsub.f32 %v43_v10, %v45_v13 }
  0x9d   :  { %v49_v15 = vmul.f32 64.0, %v47_v14 }
  0x9f   :  { %51 = vst [vmem:[#allocation5 + $0x8] sm:$0xff] %v49_v15 }
  0xa0   :  { %109 = shalt.err (!%p106_p12)
}
  0xa1   :  { %s110_s30 = scalar_lea.hbm %s183_s2, 256 }
  0xa2   :  { %p111_p13 = scmp.ne.s32.totalorder %s183_s2, %s110_s30  ;;  %p114_p0 = scmp.lt.u32.totalorder %s110_s30, %s183_s2 }
  0xa4   :  { %p116_p1 = pnand %p114_p0, %p111_p13 }
  0xa6   :  { %119 = shalt.err (!%p116_p1)
}
  0xa7   :  { %63 = dma.vmem_to_hbm [thread:$0]  %s58_s27, 256, %s183_s2, [#allocation4], %s125_s19, %s125_s19, %s126_s20  }
  0xa8   :  { %122 = dma.done.wait [#allocation4], 256  }
  0xa9   :  { %123 = vsyncadd [#allocation4], 4294967040 }
  0xaa   :  { %67 = vsyncpa [#allocation3], 1 }
  0xab   :  { %68 = vsyncpa [#allocation4], 1 }

</bundles_post_ra>
